<compile_context>
chip_gen: v6e
topology: v6e:2x2x1
jax: 0.10.0
libtpu: 0.0.40
codegen_flags: <defaults>
</compile_context>

<pallas_src>
import numpy as np
import jax
import jax.numpy as jnp
from jax.experimental import pallas as pl
from jax.experimental.pallas import tpu as pltpu


HALF_PI = np.float32(np.pi / 2.0)


def _round_up(x, m):
    return ((x + m - 1) // m) * m


def _freqs_np(dim, max_period):
    half = dim // 2
    if half == 0:
        return np.zeros((0,), np.float32)
    return np.exp(
        -np.log(max_period) * np.arange(half, dtype=np.float64) / half
    ).astype(np.float32)


# ---------------------------------------------------------------------------
# Packed path: 2 <= dim <= 128 and 128 % dim == 0.
# Each 128-lane output row packs k = 128 // dim consecutive batch rows'
# embeddings row-major, so the wrapper-side reshape back to (B, dim) is a
# contiguous no-shuffle reshape.
# ---------------------------------------------------------------------------
def _packed_tables_np(dim, max_period):
    half = dim // 2
    k = 128 // dim
    freqs = _freqs_np(dim, max_period)                        # (half,)
    lane = np.arange(128)
    j = lane % dim                                            # feature index within one embedding
    row = lane // dim                                         # which of the k packed batch rows
    freq_lane = freqs[j % half]                               # (128,)
    # sel_freq[r, l] = freq_lane[l] if lane l belongs to packed row r else 0.
    sel_freq = np.where(row[None, :] == np.arange(k)[:, None],
                        freq_lane[None, :], 0.0).astype(np.float32)   # (k, 128)
    # cos lanes (j < half) get a +pi/2 phase: cos(x) = sin(x + pi/2).
    phase = np.where(j < half, HALF_PI, 0.0).astype(np.float32).reshape(1, 128)
    return sel_freq, phase


def _make_packed_kernel(k):
    use_mxu = k >= 8   # clear win for small dim; marginal below k=8

    def kernel(t_ref, sel_freq_ref, phase_ref, o_ref):
        t = t_ref[...]                                        # (rows_blk, k) f32
        sf = sel_freq_ref[...]                                # (k, 128) f32
        if use_mxu:
            args = jnp.dot(t, sf, preferred_element_type=jnp.float32)
        else:
            args = t[:, 0:1] * sf[0:1, :]
            for r in range(1, k):
                args = args + t[:, r:r + 1] * sf[r:r + 1, :]
        # Single transcendental per lane; single full-width (128-lane) store.
        o_ref[...] = jnp.sin(args + phase_ref[...])

    return kernel


# ---------------------------------------------------------------------------
# General path: any dim. Lane-dense output of width round_up(dim, 128).
# ---------------------------------------------------------------------------
def _general_tables_np(dim, max_period, dim_pad):
    half = dim // 2
    freq_full = np.zeros((1, dim_pad), np.float32)
    phase = np.zeros((1, dim_pad), np.float32)
    if half > 0:
        freqs = _freqs_np(dim, max_period)
        freq_full[0, :half] = freqs                # cos lanes
        freq_full[0, half:2 * half] = freqs        # sin lanes
        phase[0, :half] = HALF_PI                  # cos(x) = sin(x + pi/2)
    # lanes >= 2*half keep freq=0, phase=0 -> sin(0)=0 (covers odd-dim pad col).
    return freq_full, phase


def _general_kernel(t_ref, freq_ref, phase_ref, o_ref):
    # (tb, 1) * (1, dim_pad) broadcast, one sin, single lane-dense store.
    o_ref[...] = jnp.sin(t_ref[...] * freq_ref[...] + phase_ref[...])


# ---------------------------------------------------------------------------
# Wrapper
# ---------------------------------------------------------------------------
def _pick_tile(b, mult, target):
    """Pick a batch tile (multiple of `mult`) and the padded batch size."""
    padded_min = _round_up(b, mult)
    tb = min(_round_up(target, mult), padded_min)
    # Keep >= 2 grid steps for large batches so the "parallel" grid axis can be
    # sharded across both TensorCores on v7x (measured no-op on v5e/v6e).
    if tb == padded_min and b >= 2048 and padded_min >= 2 * mult:
        tb = _round_up(padded_min // 2, mult)
    padded_b = _round_up(padded_min, tb)
    return tb, padded_b


def timestep_embedding(timesteps, dim, max_period=10000):
    """Pallas implementation of TimestepEmbedding.forward.

    Returns (B, dim) float32: [cos(t*f) | sin(t*f) | optional zero pad column].
    """
    b = timesteps.shape[0]
    t = timesteps.astype(jnp.float32)
    use_packed = (dim >= 2) and (dim <= 128) and (128 % dim == 0)

    if use_packed:
        k = 128 // dim                       # batch rows packed per 128-lane row
        mult = 8 * k                         # keeps packed-row blocks multiples of 8
        tb, padded_b = _pick_tile(b, mult, 8192)
        grid = (padded_b // tb,)
        rows_blk = tb // k

        t_pad = jnp.pad(t, (0, padded_b - b)).reshape(padded_b // k, k)
        sel_freq_np, phase_np = _packed_tables_np(dim, max_period)
        sel_freq = jnp.asarray(sel_freq_np)
        phase = jnp.asarray(phase_np)

        out_packed = pl.pallas_call(
            _make_packed_kernel(k),
            out_shape=jax.ShapeDtypeStruct((padded_b // k, 128), jnp.float32),
            grid=grid,
            in_specs=[
                pl.BlockSpec((rows_blk, k), lambda i: (i, 0)),
                pl.BlockSpec((k, 128), lambda i: (0, 0)),     # constants: fetched once
                pl.BlockSpec((1, 128), lambda i: (0, 0)),
            ],
            out_specs=pl.BlockSpec((rows_blk, 128), lambda i: (i, 0)),
            compiler_params=pltpu.CompilerParams(
                dimension_semantics=("parallel",)),
            cost_estimate=pl.CostEstimate(
                flops=2 * padded_b * 128,
                transcendentals=padded_b * dim,
                bytes_accessed=(padded_b * 4                  # timesteps read
                                + padded_b * dim * 4          # written slab
                                + (k + 1) * 128 * 4)),        # constant tables
        )(t_pad, sel_freq, phase)
        # Row-major contiguous unpack: pure layout plumbing, no data shuffle.
        out = out_packed.reshape(padded_b, dim)[:b]
    else:
        dim_pad = _round_up(max(dim, 1), 128)
        mult = 8
        # Bound the tile so the double-buffered output block stays ~<= 1 MiB.
        vmem_rows = max(mult, ((1 << 20) // (4 * dim_pad)) // mult * mult)
        tb, padded_b = _pick_tile(b, mult, min(4096, vmem_rows))
        grid = (padded_b // tb,)

        t_pad = jnp.pad(t, (0, padded_b - b)).reshape(padded_b, 1)
        freq_np, phase_np = _general_tables_np(dim, max_period, dim_pad)
        freq_full = jnp.asarray(freq_np)
        phase = jnp.asarray(phase_np)

        out_full = pl.pallas_call(
            _general_kernel,
            out_shape=jax.ShapeDtypeStruct((padded_b, dim_pad), jnp.float32),
            grid=grid,
            in_specs=[
                pl.BlockSpec((tb, 1), lambda i: (i, 0)),
                pl.BlockSpec((1, dim_pad), lambda i: (0, 0)),  # constants: fetched once
                pl.BlockSpec((1, dim_pad), lambda i: (0, 0)),
            ],
            out_specs=pl.BlockSpec((tb, dim_pad), lambda i: (i, 0)),
            compiler_params=pltpu.CompilerParams(
                dimension_semantics=("parallel",)),
            cost_estimate=pl.CostEstimate(
                flops=2 * padded_b * dim_pad,
                transcendentals=padded_b * dim_pad,
                bytes_accessed=(padded_b * 4
                                + padded_b * dim_pad * 4
                                + 2 * dim_pad * 4)),
        )(t_pad, freq_full, phase)
        out = out_full[:b, :dim]

    return out


def _reference(timesteps, dim, max_period=10000):
    """Pure-JAX reference mirroring the PyTorch forward."""
    half = dim // 2
    t = timesteps.astype(jnp.float32)
    if half > 0:
        freqs = jnp.asarray(_freqs_np(dim, max_period))
        args = t[:, None] * freqs[None, :]
        emb = jnp.concatenate([jnp.cos(args), jnp.sin(args)], axis=-1)
    else:
        emb = jnp.zeros((t.shape[0], 0), jnp.float32)
    if dim % 2:
        emb = jnp.concatenate(
            [emb, jnp.zeros((emb.shape[0], 1), emb.dtype)], axis=-1)
    return emb


if __name__ == "__main__":
    key = jax.random.PRNGKey(0)
    B, DIM = 8, 32   # small shapes consistent with a diffusion timestep MLP

    timesteps = jax.random.randint(key, (B,), 0, 1000).astype(jnp.float32)

    out = jax.block_until_ready(timestep_embedding(timesteps, DIM))
    ref = _reference(timesteps, DIM)
    assert out.shape == (B, DIM), out.shape
    # atol accommodates the cos(x)=sin(x+pi/2) fold (~3e-5 abs at t*freq ~ 1e3).
    np.testing.assert_allclose(np.asarray(out), np.asarray(ref),
                               rtol=1e-5, atol=1e-4)

    # Multi-step grid + megacore split (packed path, grid length 2).
    B2 = 2048
    t2 = jax.random.randint(jax.random.PRNGKey(1), (B2,), 0, 1000).astype(
        jnp.float32)
    out2 = jax.block_until_ready(timestep_embedding(t2, DIM))
    np.testing.assert_allclose(np.asarray(out2),
                               np.asarray(_reference(t2, DIM)),
                               rtol=1e-5, atol=1e-4)

    # General lane-dense path; odd dim exercises the zero pad column.
    B3, DIM3 = 16, 65
    t3 = jax.random.randint(jax.random.PRNGKey(2), (B3,), 0, 1000).astype(
        jnp.float32)
    out3 = jax.block_until_ready(timestep_embedding(t3, DIM3))
    np.testing.assert_allclose(np.asarray(out3),
                               np.asarray(_reference(t3, DIM3)),
                               rtol=1e-5, atol=1e-4)

    print("KERNEL_OK")
</pallas_src>

<mosaic_0001>
module attributes {stable_mosaic.version = 11 : i64} {
  func.func @kernel(%arg0: i32, %arg1: memref<8x4xf32, #tpu.memory_space<vmem>>, %arg2: memref<4x128xf32, #tpu.memory_space<vmem>>, %arg3: memref<1x128xf32, #tpu.memory_space<vmem>>, %arg4: memref<8x128xf32, #tpu.memory_space<vmem>>) attributes {dimension_semantics = [#tpu.dimension_semantics<parallel>], iteration_bounds = array<i64: 1>, scalar_prefetch = 0 : i64, scratch_operands = 0 : i64, tpu.core_type = #tpu.core_type<tc>, window_params = [{transform_indices = @transform_0, window_bounds = array<i64: 8, 4>}, {pipeline_mode = #tpu.pipeline_mode<synchronous>, transform_indices = @transform_1, window_bounds = array<i64: 4, 128>}, {pipeline_mode = #tpu.pipeline_mode<synchronous>, transform_indices = @transform_2, window_bounds = array<i64: 1, 128>}, {transform_indices = @transform_3, window_bounds = array<i64: 8, 128>}]} {
    %c0 = arith.constant 0 : index
    %c0_0 = arith.constant 0 : index
    %0 = vector.load %arg1[%c0, %c0_0] : memref<8x4xf32, #tpu.memory_space<vmem>>, vector<8x4xf32>
    %c0_1 = arith.constant 0 : index
    %c0_2 = arith.constant 0 : index
    %1 = vector.load %arg2[%c0_1, %c0_2] : memref<4x128xf32, #tpu.memory_space<vmem>>, vector<4x128xf32>
    %2 = vector.extract_strided_slice %0 {offsets = [0, 0], sizes = [8, 1], strides = [1, 1]} : vector<8x4xf32> to vector<8x1xf32>
    %3 = vector.extract_strided_slice %1 {offsets = [0, 0], sizes = [1, 128], strides = [1, 1]} : vector<4x128xf32> to vector<1x128xf32>
    %4 = vector.broadcast %2 : vector<8x1xf32> to vector<8x128xf32>
    %5 = vector.broadcast %3 : vector<1x128xf32> to vector<8x128xf32>
    %6 = arith.mulf %4, %5 : vector<8x128xf32>
    %7 = vector.extract_strided_slice %0 {offsets = [0, 1], sizes = [8, 1], strides = [1, 1]} : vector<8x4xf32> to vector<8x1xf32>
    %8 = vector.extract_strided_slice %1 {offsets = [1, 0], sizes = [1, 128], strides = [1, 1]} : vector<4x128xf32> to vector<1x128xf32>
    %9 = vector.broadcast %7 : vector<8x1xf32> to vector<8x128xf32>
    %10 = vector.broadcast %8 : vector<1x128xf32> to vector<8x128xf32>
    %11 = arith.mulf %9, %10 : vector<8x128xf32>
    %12 = arith.addf %6, %11 : vector<8x128xf32>
    %13 = vector.extract_strided_slice %0 {offsets = [0, 2], sizes = [8, 1], strides = [1, 1]} : vector<8x4xf32> to vector<8x1xf32>
    %14 = vector.extract_strided_slice %1 {offsets = [2, 0], sizes = [1, 128], strides = [1, 1]} : vector<4x128xf32> to vector<1x128xf32>
    %15 = vector.broadcast %13 : vector<8x1xf32> to vector<8x128xf32>
    %16 = vector.broadcast %14 : vector<1x128xf32> to vector<8x128xf32>
    %17 = arith.mulf %15, %16 : vector<8x128xf32>
    %18 = arith.addf %12, %17 : vector<8x128xf32>
    %19 = vector.extract_strided_slice %0 {offsets = [0, 3], sizes = [8, 1], strides = [1, 1]} : vector<8x4xf32> to vector<8x1xf32>
    %20 = vector.extract_strided_slice %1 {offsets = [3, 0], sizes = [1, 128], strides = [1, 1]} : vector<4x128xf32> to vector<1x128xf32>
    %21 = vector.broadcast %19 : vector<8x1xf32> to vector<8x128xf32>
    %22 = vector.broadcast %20 : vector<1x128xf32> to vector<8x128xf32>
    %23 = arith.mulf %21, %22 : vector<8x128xf32>
    %24 = arith.addf %18, %23 : vector<8x128xf32>
    %c0_3 = arith.constant 0 : index
    %c0_4 = arith.constant 0 : index
    %25 = vector.load %arg3[%c0_3, %c0_4] : memref<1x128xf32, #tpu.memory_space<vmem>>, vector<1x128xf32>
    %26 = vector.broadcast %25 : vector<1x128xf32> to vector<8x128xf32>
    %27 = arith.addf %24, %26 : vector<8x128xf32>
    %28 = math.sin %27 : vector<8x128xf32>
    %c0_5 = arith.constant 0 : index
    %c0_6 = arith.constant 0 : index
    %29 = vector.load %arg4[%c0_5, %c0_6] : memref<8x128xf32, #tpu.memory_space<vmem>>, vector<8x128xf32>
    tpu.vector_store %arg4[%c0_5, %c0_6], %28 {strides = array<i32>} : memref<8x128xf32, #tpu.memory_space<vmem>>, vector<8x128xf32>,
    return
  }
  func.func @transform_0(%arg0: i32) -> (i32, i32) {
    %c0_i32 = arith.constant 0 : i32
    %c0_i32_0 = arith.constant 0 : i32
    return %arg0, %c0_i32 : i32, i32
  }
  func.func @transform_1(%arg0: i32) -> (i32, i32) {
    %c0_i32 = arith.constant 0 : i32
    %c0_i32_0 = arith.constant 0 : i32
    %c0_i32_1 = arith.constant 0 : i32
    return %c0_i32, %c0_i32_0 : i32, i32
  }
  func.func @transform_2(%arg0: i32) -> (i32, i32) {
    %c0_i32 = arith.constant 0 : i32
    %c0_i32_0 = arith.constant 0 : i32
    %c0_i32_1 = arith.constant 0 : i32
    return %c0_i32, %c0_i32_0 : i32, i32
  }
  func.func @transform_3(%arg0: i32) -> (i32, i32) {
    %c0_i32 = arith.constant 0 : i32
    %c0_i32_0 = arith.constant 0 : i32
    return %arg0, %c0_i32 : i32, i32
  }
}

</mosaic_0001>

<bundles_post_ra>
// kernel: tpu_custom_call.1
= control target key start
LH: loop header
LB: loop body
LE: loop exit
PB: predicated region body
PF: predicated region fallthrough
CT: control target
= control target key end

     0   :  { %v235_v1 = vmov 0   ;;  %v236_v2 = vmov 2   ;;  %s299_s0 = inlined_call_operand.vmem [shape: f32[8,4], index: 0, kind: input, shape index: {}]   ;;  %s300_s1 = inlined_call_operand.vmem [shape: f32[4,128], index: 1, kind: input, shape index: {}]   ;;  %s301_s2 = inlined_call_operand.vmem [shape: f32[1,128], index: 2, kind: input, shape index: {}]   ;;  %s302_s3 = inlined_call_operand.hbm [shape: f32[8,128], index: 3, kind: output, shape index: {}]  }
   0x1   :  { %v15_v0 = vld [vmem:[%s299_s0] sm:$0xff]  ;;  %204 = vset.pattern.permute.xlu0 %v235_v1  ;;  %206 = vset.pattern.permute.xlu1 %v236_v2 }
   0x2   :  { %8 = vsyncpa [#allocation3], 0  ;;  %19 = vperm.xlu0 %204, %v15_v0   ;;  %38 = vperm.xlu1 %206, %v15_v0   ;;  %v237_v3 = vmov 1   ;;  %v238_v4 = vmov 3   ;;  %v22_v5 = vlaneseq  ;;  %v16_v9 = vld [vmem:[%s300_s1] sm:$0xf] }
   0x3   :  { %v184_v26 = vld [vmem:[%s301_s2] ss:$0 sm:$0xff]  ;;  %v239_v39 = vmov 683565275   ;;  %v240_v41 = vmov 2475754826  }
   0x4   :  { %v23_v6 = vshrl.u32 %v22_v5, 7  ;;  %v241_v44 = vmov 2131351028   ;;  %v242_v47 = vmov 2102212464   ;;  %s245_s1 = smov [#allocation2]  }
   0x5   :  { %v243_v50 = vmov 920167782   ;;  %v244_v53 = vmov 1326507024   ;;  %s176_s2 = sshll.u32 %s245_s1, 4  ;;  %s177_s2 = int_to_ptr.vmem [resolvable:$true] %s176_s2 }
   0x6   :  { %205 = vset.pattern.permute.xlu0 %v237_v3  ;;  %207 = vset.pattern.permute.xlu1 %v238_v4  ;;  %v24_v7 = vsub.s32 0, %v23_v6  ;;  %v33_v8 = vsub.s32 1, %v23_v6  ;;  %v43_v11 = vsub.s32 2, %v23_v6  ;;  %v53_v13 = vsub.s32 3, %v23_v6  ;;  %s213_s17 = scalar_lea.vmem %s177_s2, 128  ;;  %p218_p1 = scmp.lt.s32.totalorder %s177_s2, %s177_s2 }
   0x7   :  { %28 = vperm.xlu0 %205, %v15_v0   ;;  %48 = vperm.xlu1 %207, %v15_v0   ;;  %p214_p0 = scmp.ne.s32.totalorder %s177_s2, %s213_s17  ;;  %p219_p2 = scmp.lt.s32.totalorder %s213_s17, %s213_s17 }
   0x8   :  { %v25_v14 = vrot.slane %v16_v9, %v24_v7  ;;  %v34_v15 = vrot.slane %v16_v9, %v33_v8  ;;  %v44_v16 = vrot.slane %v16_v9, %v43_v11  ;;  %v54_v17 = vrot.slane %v16_v9, %v53_v13 }
   0x9   :  { %p220_p3 = por %p219_p2, %p218_p1 }
   0xb   :  { %208 = vset.pattern.permute.xlu0 %v238_v4  ;;  %p221_p4 = pnand %p220_p3, %p214_p0 }
  0x7d   :  { %v20_v10 = vpop.permute.xlu0 %19  ;;  %v39_v12 = vpop.permute.xlu1 %38 }
  0x7e   :  { %v26_v20 = vmul.f32 %v25_v14, %v20_v10  ;;  %v45_v22 = vmul.f32 %v44_v16, %v39_v12 }
  0x82   :  { %v29_v18 = vpop.permute.xlu0 %28  ;;  %v49_v19 = vpop.permute.xlu1 %48 }
  0x83   :  { %v35_v21 = vmul.f32 %v34_v15, %v29_v18  ;;  %v55_v24 = vmul.f32 %v54_v17, %v49_v19 }
  0x85   :  { %v36_v23 = vadd.f32 %v35_v21, %v26_v20 }
  0x87   :  { %v46_v25 = vadd.f32 %v45_v22, %v36_v23 }
  0x89   :  { %v56_v27 = vadd.f32 %v55_v24, %v46_v25 }
  0x8b   :  { %v275_v28 = vadd.f32 %v184_v26, %v56_v27 }
  0x8d   :  { %v68_v29 = vand.u32 2139095040, %v275_v28  ;;  %v65_v33 = vand.u32 2147483647, %v275_v28  ;;  %vm67_vm7 = vcmp.lt.s32.totalorder %v275_v28, 0  ;;  %vm157_vm12 = vweird.f32 %v275_v28 }
  0x8f   :  { %v69_v30 = vshrl.u32 %v68_v29, 23  ;;  %v72_v37 = vand.u32 8388607, %v65_v33  ;;  %vm66_vm8 = vcmp.le.f32.partialorder %v65_v33, 0.7853982 }
  0x91   :  { %v185_v31 = vadd.s32 4294967169, %v69_v30  ;;  %v73_v55 = vor.u32 8388608, %v72_v37 }
  0x93   :  { %v75_v32 = vadd.s32 1, %v185_v31  ;;  %v113_v5 = vshll.u32 %v73_v55, 8 }
  0x95   :  { %vm76_vm0 = vcmp.gt.s32.totalorder %v75_v32, 0 }
  0x96   :  { %v77_v34 = vsel %vm76_vm0, %v75_v32, 0 }
  0x97   :  { %v79_v35 = vand.u32 31, %v77_v34  ;;  %v78_v38 = vshrl.u32 %v77_v34, 5 }
  0x99   :  { %v80_v36 = vsub.s32 32, %v79_v35  ;;  %v82_v40 = vshll.u32 %v239_v39, %v79_v35  ;;  %v85_v42 = vshll.u32 %v240_v41, %v79_v35  ;;  %v88_v46 = vshll.u32 %v241_v44, %v79_v35 }
  0x9a   :  { %v91_v49 = vshll.u32 %v242_v47, %v79_v35  ;;  %v94_v52 = vshll.u32 %v243_v50, %v79_v35  ;;  %vm97_vm1 = vcmp.lt.s32.totalorder %v78_v38, 1  ;;  %vm100_vm2 = vcmp.lt.s32.totalorder %v78_v38, 4 }
  0x9b   :  { %v83_v43 = vshrl.u32 %v240_v41, %v80_v36  ;;  %v86_v45 = vshrl.u32 %v241_v44, %v80_v36  ;;  %v89_v48 = vshrl.u32 %v242_v47, %v80_v36  ;;  %v92_v51 = vshrl.u32 %v243_v50, %v80_v36 }
  0x9c   :  { %v95_v54 = vshrl.u32 %v244_v53, %v80_v36  ;;  %v81_v0 = vshrl.u32 %v239_v39, %v80_v36  ;;  %vm99_vm3 = vcmp.lt.s32.totalorder %v78_v38, 3  ;;  %vm98_vm4 = vcmp.lt.s32.totalorder %v78_v38, 2 }
  0x9d   :  { %v84_v56 = vor.u32 %v83_v43, %v82_v40  ;;  %v87_v57 = vor.u32 %v86_v45, %v85_v42  ;;  %v90_v58 = vor.u32 %v89_v48, %v88_v46  ;;  %v93_v59 = vor.u32 %v92_v51, %v91_v49 }
  0x9e   :  { %v96_v60 = vor.u32 %v95_v54, %v94_v52 }
  0x9f   :  { %v102_v61 = vsel %vm100_vm2, %v90_v58, 2102212464  ;;  %v105_v62 = vsel %vm97_vm1, %v84_v56, %v87_v57  ;;  %v109_v63 = vsel %vm97_vm1, %v87_v57, %v90_v58  ;;  %v106_v1 = vsel %vm100_vm2, %v93_v59, 920167782 }
  0xa0   :  { %v110_v2 = vsel %vm100_vm2, %v96_v60, 1326507024  ;;  %v107_v3 = vsel %vm99_vm3, %v90_v58, %v106_v1  ;;  %v101_v6 = vsel %vm97_vm1, %v81_v0, %v84_v56  ;;  %v103_v7 = vsel %vm99_vm3, %v87_v57, %v102_v61 }
  0xa1   :  { %v111_v4 = vsel %vm99_vm3, %v93_v59, %v110_v2  ;;  %v108_v8 = vsel %vm98_vm4, %v105_v62, %v107_v3  ;;  %v104_v14 = vsel %vm98_vm4, %v101_v6, %v103_v7 }
  0xa2   :  { %v112_v9 = vsel %vm98_vm4, %v109_v63, %v111_v4  ;;  %v284_v12 = vmul.u32.u64.low %v113_v5, %v108_v8  ;;  %v285_v13 = vmul.u32.u64.high %v113_v5, %v108_v8, %v284_v12  ;;  %v120_v16 = vmul.u32 %v113_v5, %v104_v14 }
  0xa3   :  { %v281_v10 = vmul.u32.u64.low %v113_v5, %v112_v9  ;;  %v282_v11 = vmul.u32.u64.high %v113_v5, %v112_v9, %v281_v10 }
  0xa4   :  { %v123_v15 = vadd.s32 1, %v285_v13 }
  0xa5   :  { %vm122_vm5 = vc.u32 %v282_v11, %v284_v12  ;;  %v121_v29 = vadd.s32 %v284_v12, %v282_v11 }
  0xa6   :  { %v124_v17 = vsel %vm122_vm5, %v123_v15, %v285_v13 }
  0xa7   :  { %v125_v18 = vadd.s32 %v124_v17, %v120_v16 }
  0xa9   :  { %v126_v19 = vadd.s32 536870912, %v125_v18 }
  0xab   :  { %v127_v20 = vshrl.u32 %v126_v19, 30 }
  0xad   :  { %v128_v21 = vshll.u32 %v127_v20, 30  ;;  %v151_v43 = vsub.s32 4, %v127_v20 }
  0xaf   :  { %v129_v22 = vsub.s32 %v125_v18, %v128_v21  ;;  %v152_v46 = vsel %vm67_vm7, %v151_v43, %v127_v20 }
  0xb0   :  { %v154_v47 = vsel %vm66_vm8, 0, %v152_v46 }
  0xb1   :  { %v131_v23 = vsub.s32 0, %v129_v22  ;;  %v158_v48 = vadd.s32 3, %v154_v47 }
  0xb3   :  { %v186_v24 = vmin.u32 %v131_v23, %v129_v22  ;;  %v159_v49 = vand.u32 3, %v158_v48 }
  0xb5   :  { %v133_v25 = vclz %v186_v24  ;;  %vm164_vm9 = vcmp.eq.s32.totalorder %v159_v49, 2  ;;  %vm161_vm10 = vcmp.eq.s32.totalorder %v159_v49, 0  ;;  %vm160_vm11 = vcmp.lt.s32.totalorder %v159_v49, 2 }
  0xb7   :  { %v187_v26 = vadd.s32 4294967294, %v133_v25 }
  0xb9   :  { %vm188_vm6 = vcmp.lt.s32.totalorder %v187_v26, 0 }
  0xba   :  { %v136_v27 = vsel %vm188_vm6, 0, %v187_v26 }
  0xbb   :  { %v137_v30 = vsub.s32 32, %v136_v27  ;;  %v141_v31 = vsub.s32 4294967266, %v136_v27  ;;  %v138_v32 = vshll.u32 %v129_v22, %v136_v27 }
  0xbd   :  { %v139_v34 = vshrl.u32 %v121_v29, %v137_v30  ;;  %v142_v35 = vadd.s32 127, %v141_v31 }
  0xbf   :  { %v140_v36 = vor.u32 %v139_v34, %v138_v32  ;;  %v143_v37 = vshll.u32 %v142_v35, 23 }
  0xc1   :  { %v144_v38 = vor.u32 4788187, %v143_v37  ;;  %v147_v40 = vcvt.s32.f32 %v140_v36 }
  0xc3   :  { %v145_v39 = vand.u32 2147483647, %v144_v38 }
  0xc5   :  { %v148_v41 = vmul.f32 %v147_v40, %v145_v39 }
  0xc7   :  { %v149_v42 = vxor.u32 2147483648, %v148_v41 }
  0xc9   :  { %v150_v44 = vsel %vm67_vm7, %v149_v42, %v148_v41 }
  0xca   :  { %v153_v45 = vsel %vm66_vm8, %v275_v28, %v150_v44 }
  0xcb   :  { %209 = vcosq.f32 %v153_v45 }
  0xcc   :  { %211 = vsinq.f32 %v153_v45 }
  0xd8   :  { %v210_v50 = vpop.eup %209 }
  0xd9   :  { %v212_v51 = vpop.eup %211  ;;  %v165_v52 = vxor.u32 2147483648, %v210_v50 }
  0xda   :  { %v162_v53 = vxor.u32 2147483648, %v212_v51 }
  0xdb   :  { %v166_v54 = vsel %vm164_vm9, %v165_v52, %v212_v51 }
  0xdc   :  { %v163_v33 = vsel %vm161_vm10, %v210_v50, %v162_v53 }
  0xdd   :  { %v167_v55 = vsel %vm160_vm11, %v163_v33, %v166_v54 }
  0xde   :  { %v168_v56 = vsel %vm157_vm12, nan, %v167_v55 }
  0xdf   :  { %169 = vst [vmem:[#allocation2] sm:$0xff] %v168_v56 }
  0xe0   :  { %224 = shalt.err (!%p221_p4)
}
  0xe1   :  { %179 = dma.vmem_to_hbm [thread:$0]  %s177_s2, 128, %s302_s3, [#allocation3]  }
  0xe2   :  { %233 = dma.done.wait [#allocation3], 128  }
  0xe3   :  { %234 = vsyncadd [#allocation3], 4294967168 }
  0xe4   :  { %183 = vsyncpa [#allocation3], 1 }

</bundles_post_ra>
